<compile_context>
chip_gen: v7x
topology: tpu7x:2x2x1
jax: 0.10.0
libtpu: 0.0.40
codegen_flags: <defaults>
</compile_context>

<pallas_src>
import jax
import jax.numpy as jnp
from jax.experimental import pallas as pl
from jax.experimental.pallas import tpu as pltpu


def _conv1x1_kernel(x_ref, w_ref, b_ref, o_ref):
    # x_ref: (Cin, T)   one spatial tile of one batch element (lane-dense on T)
    # w_ref: (Cout, Cin)
    # b_ref: (Cout, 1)
    # o_ref: (Cout, T)
    o_ref[...] = (
        jnp.dot(w_ref[...], x_ref[...], preferred_element_type=jnp.float32)
        + b_ref[...]
    ).astype(o_ref.dtype)


def _pick_hw_tile(hw):
    """Largest lane-aligned tile (multiple of 128) that divides H*W, capped at 4096.
    Falls back to the full extent when H*W is not a multiple of 128."""
    if hw % 128 != 0:
        return hw
    t = min(hw, 4096)
    while hw % t != 0:
        t -= 128
    return t


@jax.jit
def part_seg_head_conv_forward(x_nchw, w, b):
    """x_nchw: (N, in_c, H, W)  ->  (N, num_classes, H, W)."""
    N, Cin, H, W = x_nchw.shape
    Cout = w.shape[0]
    hw = H * W
    x = x_nchw.reshape(N, Cin, hw).astype(jnp.float32)   # free reshape of NCHW
    t = _pick_hw_tile(hw)

    out = pl.pallas_call(
        _conv1x1_kernel,
        grid=(N, hw // t),
        in_specs=[
            # None => squeezed batch dim; last two block dims are (Cin, t):
            # Cin equals the full array dim, t is a multiple of 128 (or full).
            pl.BlockSpec((None, Cin, t), lambda n, s: (n, 0, s)),
            pl.BlockSpec((Cout, Cin), lambda n, s: (0, 0)),
            pl.BlockSpec((Cout, 1), lambda n, s: (0, 0)),
        ],
        out_specs=pl.BlockSpec((None, Cout, t), lambda n, s: (n, 0, s)),
        out_shape=jax.ShapeDtypeStruct((N, Cout, hw), jnp.float32),
        compiler_params=pltpu.CompilerParams(
            dimension_semantics=("parallel", "parallel")),
    )(x, w, b)

    return out.reshape(N, Cout, H, W)


def init_params(key, in_c, num_classes):
    # PyTorch Conv2d weight layout (out_c, in_c, 1, 1), normal std=0.001; bias = 0.
    w4 = 0.001 * jax.random.normal(key, (num_classes, in_c, 1, 1), jnp.float32)
    w = w4[:, :, 0, 0]                                   # (num_classes, in_c)
    b = jnp.zeros((num_classes, 1), jnp.float32)         # (num_classes, 1)
    return w, b


if __name__ == "__main__":
    cfg = {"in_c": 4, "num_classes": 5}
    batch, spatial = 2, 16

    key = jax.random.PRNGKey(0)
    kx, kp = jax.random.split(key)
    x = jax.random.normal(kx, (batch, cfg["in_c"], spatial, spatial), jnp.float32)
    w, b = init_params(kp, cfg["in_c"], cfg["num_classes"])

    out = part_seg_head_conv_forward(x, w, b)
    out = jax.block_until_ready(out)

    expected = (batch, cfg["num_classes"], spatial, spatial)
    assert out.shape == expected, (out.shape, expected)
    assert bool(jnp.all(jnp.isfinite(out)))

    # Plain-JAX reference check of the 1x1 conv (+ bias).
    ref = jnp.einsum("oc,nchw->nohw", w, x) + b.reshape(1, -1, 1, 1)
    assert bool(jnp.allclose(out, ref, atol=2e-5, rtol=1e-4))

    print("KERNEL_OK")
</pallas_src>

<mosaic_0001>
module attributes {stable_mosaic.version = 11 : i64} {
  func.func @_conv1x1_kernel(%arg0: i32, %arg1: i32, %arg2: memref<1x4x256xf32, #tpu.memory_space<vmem>>, %arg3: memref<5x4xf32, #tpu.memory_space<vmem>>, %arg4: memref<5x1xf32, #tpu.memory_space<vmem>>, %arg5: memref<1x5x256xf32, #tpu.memory_space<vmem>>) attributes {dimension_semantics = [#tpu.dimension_semantics<parallel>, #tpu.dimension_semantics<parallel>], iteration_bounds = array<i64: 2, 1>, scalar_prefetch = 0 : i64, scratch_operands = 0 : i64, tpu.core_type = #tpu.core_type<tc>, window_params = [{transform_indices = @transform_0, window_bounds = array<i64: 1, 4, 256>}, {pipeline_mode = #tpu.pipeline_mode<synchronous>, transform_indices = @transform_1, window_bounds = array<i64: 5, 4>}, {pipeline_mode = #tpu.pipeline_mode<synchronous>, transform_indices = @transform_2, window_bounds = array<i64: 5, 1>}, {transform_indices = @transform_3, window_bounds = array<i64: 1, 5, 256>}]} {
    %c0 = arith.constant 0 : index
    %c0_0 = arith.constant 0 : index
    %0 = vector.load %arg3[%c0, %c0_0] : memref<5x4xf32, #tpu.memory_space<vmem>>, vector<5x4xf32>
    %c0_1 = arith.constant 0 : index
    %c0_2 = arith.constant 0 : index
    %c0_3 = arith.constant 0 : index
    %1 = vector.load %arg2[%c0_1, %c0_2, %c0_3] : memref<1x4x256xf32, #tpu.memory_space<vmem>>, vector<1x4x256xf32>
    %2 = vector.shape_cast %1 : vector<1x4x256xf32> to vector<4x256xf32>
    %cst = arith.constant dense<0.000000e+00> : vector<5x256xf32>
    %3 = tpu.matmul %0, %2, %cst {dimension_numbers = #tpu.dot_dimension_numbers<[1], [0], [0], [1], [0, 0, 1, 1], [], []>} : vector<5x4xf32>, vector<4x256xf32>, vector<5x256xf32> -> vector<5x256xf32>
    %c0_4 = arith.constant 0 : index
    %c0_5 = arith.constant 0 : index
    %4 = vector.load %arg4[%c0_4, %c0_5] : memref<5x1xf32, #tpu.memory_space<vmem>>, vector<5x1xf32>
    %5 = vector.broadcast %4 : vector<5x1xf32> to vector<5x256xf32>
    %6 = arith.addf %3, %5 : vector<5x256xf32>
    %c0_6 = arith.constant 0 : index
    %c0_7 = arith.constant 0 : index
    %c0_8 = arith.constant 0 : index
    %7 = vector.load %arg5[%c0_6, %c0_7, %c0_8] : memref<1x5x256xf32, #tpu.memory_space<vmem>>, vector<1x5x256xf32>
    %8 = vector.shape_cast %7 : vector<1x5x256xf32> to vector<5x256xf32>
    %9 = vector.shape_cast %6 : vector<5x256xf32> to vector<1x5x256xf32>
    tpu.vector_store %arg5[%c0_6, %c0_7, %c0_8], %9 {strides = array<i32>} : memref<1x5x256xf32, #tpu.memory_space<vmem>>, vector<1x5x256xf32>,
    return
  }
  func.func @transform_0(%arg0: i32, %arg1: i32) -> (i32, i32, i32) {
    %c0_i32 = arith.constant 0 : i32
    %c0_i32_0 = arith.constant 0 : i32
    return %arg0, %c0_i32, %arg1 : i32, i32, i32
  }
  func.func @transform_1(%arg0: i32, %arg1: i32) -> (i32, i32) {
    %c0_i32 = arith.constant 0 : i32
    %c0_i32_0 = arith.constant 0 : i32
    %c0_i32_1 = arith.constant 0 : i32
    return %c0_i32, %c0_i32_0 : i32, i32
  }
  func.func @transform_2(%arg0: i32, %arg1: i32) -> (i32, i32) {
    %c0_i32 = arith.constant 0 : i32
    %c0_i32_0 = arith.constant 0 : i32
    %c0_i32_1 = arith.constant 0 : i32
    return %c0_i32, %c0_i32_0 : i32, i32
  }
  func.func @transform_3(%arg0: i32, %arg1: i32) -> (i32, i32, i32) {
    %c0_i32 = arith.constant 0 : i32
    %c0_i32_0 = arith.constant 0 : i32
    return %arg0, %c0_i32, %arg1 : i32, i32, i32
  }
}

</mosaic_0001>

<bundles_post_ra>
// kernel: part_seg_head_conv_forward.1
= control target key start
LH: loop header
LB: loop body
LE: loop exit
PB: predicated region body
PF: predicated region fallthrough
CT: control target
= control target key end

     0   :  { %s479_s12 = smov 0   ;;  %s481_s13 = smov 0   ;;  %s518_s0 = inlined_call_operand.vmem [shape: f32[2,4,256], index: 0, kind: input, shape index: {}]   ;;  %s519_s1 = inlined_call_operand.vmem [shape: f32[5,4], index: 1, kind: input, shape index: {}]   ;;  %s520_s2 = inlined_call_operand.vmem [shape: f32[5,1], index: 2, kind: input, shape index: {}]   ;;  %s521_s3 = inlined_call_operand.vmem [shape: f32[2,5,256], index: 3, kind: output, shape index: {}]  }
   0x1   :  { %s483_s14 = smov 0  }
   0x2 LB: > { %s25_s15 = sadd.s32 1, %s451_s13  ;;  %p393_p0 = scmp.ge.s32.totalorder %s455_s14, 1  ;;  %s455_s14 = sphi %s483_s14, %s13_s14   ;;  %s451_s13 = sphi %s481_s13, %s523_s13   ;;  %s447_s12 = sphi %s479_s12, %s522_s12  }
   0x3   : > { %p27_p1 = scmp.ge.s32.totalorder %s25_s15, 2  ;;  %p158_p2 = scmp.lt.s32.totalorder %s455_s14, 3 }
   0x5   : > { %s525_s15 = smov (%p27_p1, %s25_s15), 0  ;;  %p159_p3 = pnand %p393_p0, %p158_p2 }
   0x6   : > { %p191_p4 = scmp.lt.s32.totalorder (!%p159_p3), %s447_s12, 1  ;;  %v457_v0 = vmov (!%p159_p3), 0.0   ;;  %v212_v1 = vld [vmem:[%s520_s2] sm:$0x1f] (!%p159_p3)  ;;  %v458_v2 = vmov (!%p159_p3), 0   ;;  %vm224_vm0 = vcmask (!%p159_p3), 1043456  }
   0x7   : > { %162 = sbr.rel (%p159_p3) target bundleno = 238 (0xee), region = 32  ;;  %293 = vmatprep.mubr.f32.mxu0 (!%p159_p3), %v457_v0  ;;  %431 = vset.pattern.permute.xlu0 (!%p159_p3), %v458_v2  ;;  %v210_v5 = vld [vmem:[%s519_s1] sm:$0x1f] (!%p159_p3)  ;;  %vm220_vm1 = vcmask (!%p159_p3), 31744  }
   0x8   : > { %215 = vperm.xlu0 (!%p159_p3), %431, %v212_v1  }
   0xe   : > { %s527_s12 = smov (!%p191_p4, %s447_s12), 1 }
   0xf   : > { %s403_s18 = sshll.u32 %s527_s12, 3  ;;  %s404_s24 = sshll.u32 %s527_s12, 4 }
  0x10   : > { %s198_s21 = scalar_lea.vmem %s518_s0, %s403_s18  ;;  %s208_s27 = scalar_lea.vmem %s521_s3, %s404_s24 }
  0x11   : > { %v211_v3 = vld [vmem:[%s198_s21] sm:$0xff] }
  0x12   : > { %v219_v4 = vcombine.high %v211_v3, %v211_v3 }
  0x14   : > { %398 = vmatprep.subr.msk.mxu0 %vm224_vm0, %v219_v4 }
  0x15   : > { %399 = vmatpush1.msk.msra.mxu0 %vm224_vm0, %v211_v3 }
  0x16   : > { %400 = vmatmul.mubr.msk.f32.vlgmr.msra.gmra.mrb[0].mxu0 %vm220_vm1, %v210_v5 }
  0x87   : > { %v216_v6 = vpop.permute.xlu0 %215 }
  0xe9   : > { %v295_v7 = vpop.f32.mrb[0].mxu0 }
  0xea   : > { %v296_v8 = vadd.f32 %v295_v7, %v216_v6  ;;  %v297_v9 = vpop.f32.mrb[1].mxu0 }
  0xeb   : > { %v298_v10 = vadd.f32 %v297_v9, %v216_v6 }
  0xec   : > { %300 = vst [vmem:[%s208_s27] sm:$0x1f] %v296_v8 }
  0xed   : > { %301 = vst [vmem:[%s208_s27 + $0x8] sm:$0x1f] %v298_v10 }
  0xee PF: > { %s13_s14 = sadd.s32 1, %s455_s14   ;;  %s522_s12 = smov %s451_s13 }
  0xef   : > { %p10_p5 = scmp.ge.s32.totalorder %s13_s14, 4   ;;  %s523_s13 = smov %s525_s15 }
  0xf1   :  { %12 = sbr.rel (!%p10_p5) target bundleno = 2 (0x2), region = 62 }

</bundles_post_ra>
